<compile_context>
chip_gen: v6e
topology: v6e:2x2x1
jax: 0.10.0
libtpu: 0.0.40
codegen_flags: <defaults>
</compile_context>

<pallas_src>
import jax
import jax.numpy as jnp
from jax.experimental import pallas as pl
from jax.experimental.pallas import tpu as pltpu

IN_FEATURES = 17
HID_FEATURES = 17
OUT_FEATURES = 11

# Batch rows per grid step.  Memory/overhead bound kernel -> big tiles amortize
# the ~0.35us per-step cost.  Double-buffered, lane-padded f32 footprint at
# TB=4096 is ~2 MiB/buffer for x and out each (<= 8 MiB total), which fits the
# default scoped VMEM on v5e/v6e/v7x.
_TB_MAX = 4096


def _round_up(n: int, m: int) -> int:
    return ((n + m - 1) // m) * m


def _iacpu_kernel(x_ref, w1_ref, b1_ref, w2_ref, b2_ref, o_ref):
    # fc1: (TB,17) @ (17,17) + (1,17), ReLU  -- MXU matmul, f32 accumulate
    x = x_ref[...]
    h = jnp.dot(x, w1_ref[...], preferred_element_type=jnp.float32) + b1_ref[...]
    h = jnp.maximum(h, 0.0)
    # fc2: (TB,17) @ (17,11) + (1,11)
    out = jnp.dot(h, w2_ref[...], preferred_element_type=jnp.float32) + b2_ref[...]
    o_ref[...] = out.astype(o_ref.dtype)


def prepare_params(w1, b1, w2, b2):
    """Hoisted, one-time parameter prep: torch-style (out,in) weights ->
    (in,out) so the hot path is a plain x @ W matmul; biases as (1,out) rows."""
    return (
        jnp.transpose(w1),          # (17, 17)
        b1.reshape(1, -1),          # (1, 17)
        jnp.transpose(w2),          # (17, 11)
        b2.reshape(1, -1),          # (1, 11)
    )


def iacpu_forward(x, w1t, b1r, w2t, b2r):
    """Fused Linear->ReLU->Linear forward.

    x:   (B, 17) float32
    w1t: (17, 17) already (in, out)
    b1r: (1, 17)
    w2t: (17, 11) already (in, out)
    b2r: (1, 11)
    returns: (B, 11) float32
    """
    B = x.shape[0]

    # Batch tile: multiple of 8 (sublane rule); cap at _TB_MAX.
    tb = min(_TB_MAX, _round_up(max(B, 1), 8))
    b_pad = _round_up(B, tb)
    if b_pad != B:
        # Pad ragged tail so every grid step sees a full (tb, 17) tile; padded
        # rows are sliced off after the kernel.
        x = jnp.pad(x, ((0, b_pad - B), (0, 0)))
    grid = (b_pad // tb,)

    # Weights/biases are tiny and resident for the whole grid (constant index
    # map); x and out stream through VMEM double-buffered per grid step.
    in_specs = [
        pl.BlockSpec((tb, IN_FEATURES), lambda i: (i, 0)),                 # x
        pl.BlockSpec((IN_FEATURES, HID_FEATURES), lambda i: (0, 0)),       # w1t
        pl.BlockSpec((1, HID_FEATURES), lambda i: (0, 0)),                 # b1
        pl.BlockSpec((HID_FEATURES, OUT_FEATURES), lambda i: (0, 0)),      # w2t
        pl.BlockSpec((1, OUT_FEATURES), lambda i: (0, 0)),                 # b2
    ]
    out_spec = pl.BlockSpec((tb, OUT_FEATURES), lambda i: (i, 0))

    flops = 2 * b_pad * (IN_FEATURES * HID_FEATURES + HID_FEATURES * OUT_FEATURES)
    bytes_accessed = (
        b_pad * (IN_FEATURES + OUT_FEATURES) * 4
        + (IN_FEATURES * HID_FEATURES + HID_FEATURES
           + HID_FEATURES * OUT_FEATURES + OUT_FEATURES) * 4
    )

    out = pl.pallas_call(
        _iacpu_kernel,
        out_shape=jax.ShapeDtypeStruct((b_pad, OUT_FEATURES), jnp.float32),
        grid=grid,
        in_specs=in_specs,
        out_specs=out_spec,
        compiler_params=pltpu.CompilerParams(
            # Batch grid axis is independent work -> shard across TensorCores
            # (2x on v7x megacore), harmless elsewhere.
            dimension_semantics=("parallel",),
        ),
        cost_estimate=pl.CostEstimate(
            flops=flops, transcendentals=0, bytes_accessed=bytes_accessed
        ),
    )(x, w1t, b1r, w2t, b2r)

    if b_pad != B:
        out = out[:B]
    return out


def init_params(key):
    """Deterministic parameter init mirroring nn.Linear shapes (torch layout)."""
    k1, k2, k3, k4 = jax.random.split(key, 4)
    # nn.Linear(17, 17): weight (17, 17), bias (17,)
    w1 = jax.random.uniform(k1, (HID_FEATURES, IN_FEATURES), jnp.float32, -0.2, 0.2)
    b1 = jax.random.uniform(k2, (HID_FEATURES,), jnp.float32, -0.2, 0.2)
    # nn.Linear(17, 11): weight (11, 17), bias (11,)
    w2 = jax.random.uniform(k3, (OUT_FEATURES, HID_FEATURES), jnp.float32, -0.2, 0.2)
    b2 = jax.random.uniform(k4, (OUT_FEATURES,), jnp.float32, -0.2, 0.2)
    return w1, b1, w2, b2


if __name__ == "__main__":
    key = jax.random.PRNGKey(0)
    kx, kp = jax.random.split(key)
    B = 8
    x = jax.random.normal(kx, (B, IN_FEATURES), jnp.float32)
    w1, b1, w2, b2 = init_params(kp)

    # One-time param prep (weight transpose / bias reshape hoisted off hot path).
    w1t, b1r, w2t, b2r = prepare_params(w1, b1, w2, b2)

    out = iacpu_forward(x, w1t, b1r, w2t, b2r)
    out = jax.block_until_ready(out)

    # Pure-JAX reference check (torch-layout weights).
    ref = jnp.maximum(x @ w1.T + b1, 0.0) @ w2.T + b2
    assert out.shape == (B, OUT_FEATURES)
    assert jnp.allclose(out, ref, atol=1e-5, rtol=1e-5)

    # Also exercise a larger, ragged batch to verify grid tiling + padding path.
    B2 = 10_000  # not a multiple of the 4096-row tile
    x2 = jax.random.normal(jax.random.PRNGKey(1), (B2, IN_FEATURES), jnp.float32)
    out2 = jax.block_until_ready(iacpu_forward(x2, w1t, b1r, w2t, b2r))
    ref2 = jnp.maximum(x2 @ w1.T + b1, 0.0) @ w2.T + b2
    assert out2.shape == (B2, OUT_FEATURES)
    assert jnp.allclose(out2, ref2, atol=1e-4, rtol=1e-4)

    print("KERNEL_OK")
</pallas_src>

<mosaic_0001>
module attributes {stable_mosaic.version = 11 : i64} {
  func.func @_iacpu_kernel(%arg0: i32, %arg1: memref<8x17xf32, #tpu.memory_space<vmem>>, %arg2: memref<17x17xf32, #tpu.memory_space<vmem>>, %arg3: memref<1x17xf32, #tpu.memory_space<vmem>>, %arg4: memref<17x11xf32, #tpu.memory_space<vmem>>, %arg5: memref<1x11xf32, #tpu.memory_space<vmem>>, %arg6: memref<8x11xf32, #tpu.memory_space<vmem>>) attributes {dimension_semantics = [#tpu.dimension_semantics<parallel>], iteration_bounds = array<i64: 1>, scalar_prefetch = 0 : i64, scratch_operands = 0 : i64, tpu.core_type = #tpu.core_type<tc>, window_params = [{transform_indices = @transform_0, window_bounds = array<i64: 8, 17>}, {pipeline_mode = #tpu.pipeline_mode<synchronous>, transform_indices = @transform_1, window_bounds = array<i64: 17, 17>}, {pipeline_mode = #tpu.pipeline_mode<synchronous>, transform_indices = @transform_2, window_bounds = array<i64: 1, 17>}, {pipeline_mode = #tpu.pipeline_mode<synchronous>, transform_indices = @transform_3, window_bounds = array<i64: 17, 11>}, {pipeline_mode = #tpu.pipeline_mode<synchronous>, transform_indices = @transform_4, window_bounds = array<i64: 1, 11>}, {transform_indices = @transform_5, window_bounds = array<i64: 8, 11>}]} {
    %c0 = arith.constant 0 : index
    %c0_0 = arith.constant 0 : index
    %0 = vector.load %arg1[%c0, %c0_0] : memref<8x17xf32, #tpu.memory_space<vmem>>, vector<8x17xf32>
    %c0_1 = arith.constant 0 : index
    %c0_2 = arith.constant 0 : index
    %1 = vector.load %arg2[%c0_1, %c0_2] : memref<17x17xf32, #tpu.memory_space<vmem>>, vector<17x17xf32>
    %cst = arith.constant dense<0.000000e+00> : vector<8x17xf32>
    %2 = tpu.matmul %0, %1, %cst {dimension_numbers = #tpu.dot_dimension_numbers<[1], [0], [0], [1], [0, 0, 1, 1], [], []>} : vector<8x17xf32>, vector<17x17xf32>, vector<8x17xf32> -> vector<8x17xf32>
    %c0_3 = arith.constant 0 : index
    %c0_4 = arith.constant 0 : index
    %3 = vector.load %arg3[%c0_3, %c0_4] : memref<1x17xf32, #tpu.memory_space<vmem>>, vector<1x17xf32>
    %4 = vector.broadcast %3 : vector<1x17xf32> to vector<8x17xf32>
    %5 = arith.addf %2, %4 : vector<8x17xf32>
    %cst_5 = arith.constant 0.000000e+00 : f32
    %6 = vector.broadcast %cst_5 : f32 to vector<8x17xf32>
    %7 = arith.maximumf %5, %6 : vector<8x17xf32>
    %c0_6 = arith.constant 0 : index
    %c0_7 = arith.constant 0 : index
    %8 = vector.load %arg4[%c0_6, %c0_7] : memref<17x11xf32, #tpu.memory_space<vmem>>, vector<17x11xf32>
    %cst_8 = arith.constant dense<0.000000e+00> : vector<8x11xf32>
    %9 = tpu.matmul %7, %8, %cst_8 {dimension_numbers = #tpu.dot_dimension_numbers<[1], [0], [0], [1], [0, 0, 1, 1], [], []>} : vector<8x17xf32>, vector<17x11xf32>, vector<8x11xf32> -> vector<8x11xf32>
    %c0_9 = arith.constant 0 : index
    %c0_10 = arith.constant 0 : index
    %10 = vector.load %arg5[%c0_9, %c0_10] : memref<1x11xf32, #tpu.memory_space<vmem>>, vector<1x11xf32>
    %11 = vector.broadcast %10 : vector<1x11xf32> to vector<8x11xf32>
    %12 = arith.addf %9, %11 : vector<8x11xf32>
    %c0_11 = arith.constant 0 : index
    %c0_12 = arith.constant 0 : index
    %13 = vector.load %arg6[%c0_11, %c0_12] : memref<8x11xf32, #tpu.memory_space<vmem>>, vector<8x11xf32>
    tpu.vector_store %arg6[%c0_11, %c0_12], %12 {strides = array<i32>} : memref<8x11xf32, #tpu.memory_space<vmem>>, vector<8x11xf32>,
    return
  }
  func.func @transform_0(%arg0: i32) -> (i32, i32) {
    %c0_i32 = arith.constant 0 : i32
    %c0_i32_0 = arith.constant 0 : i32
    return %arg0, %c0_i32 : i32, i32
  }
  func.func @transform_1(%arg0: i32) -> (i32, i32) {
    %c0_i32 = arith.constant 0 : i32
    %c0_i32_0 = arith.constant 0 : i32
    %c0_i32_1 = arith.constant 0 : i32
    return %c0_i32, %c0_i32_0 : i32, i32
  }
  func.func @transform_2(%arg0: i32) -> (i32, i32) {
    %c0_i32 = arith.constant 0 : i32
    %c0_i32_0 = arith.constant 0 : i32
    %c0_i32_1 = arith.constant 0 : i32
    return %c0_i32, %c0_i32_0 : i32, i32
  }
  func.func @transform_3(%arg0: i32) -> (i32, i32) {
    %c0_i32 = arith.constant 0 : i32
    %c0_i32_0 = arith.constant 0 : i32
    %c0_i32_1 = arith.constant 0 : i32
    return %c0_i32, %c0_i32_0 : i32, i32
  }
  func.func @transform_4(%arg0: i32) -> (i32, i32) {
    %c0_i32 = arith.constant 0 : i32
    %c0_i32_0 = arith.constant 0 : i32
    %c0_i32_1 = arith.constant 0 : i32
    return %c0_i32, %c0_i32_0 : i32, i32
  }
  func.func @transform_5(%arg0: i32) -> (i32, i32) {
    %c0_i32 = arith.constant 0 : i32
    %c0_i32_0 = arith.constant 0 : i32
    return %arg0, %c0_i32 : i32, i32
  }
}

</mosaic_0001>

<bundles_post_ra>
// kernel: tpu_custom_call.1
= control target key start
LH: loop header
LB: loop body
LE: loop exit
PB: predicated region body
PF: predicated region fallthrough
CT: control target
= control target key end

     0   :  { %vm36_vm0 = vcmask 1040384   ;;  %v270_v1 = vmov 0.0   ;;  %vm271_vm1 = vmmov 0   ;;  %s337_s0 = inlined_call_operand.vmem [shape: f32[8,17], index: 0, kind: input, shape index: {}]   ;;  %s338_s1 = inlined_call_operand.vmem [shape: f32[17,17], index: 1, kind: input, shape index: {}]   ;;  %s339_s2 = inlined_call_operand.vmem [shape: f32[1,17], index: 2, kind: input, shape index: {}]   ;;  %s340_s3 = inlined_call_operand.vmem [shape: f32[17,11], index: 3, kind: input, shape index: {}]   ;;  %s341_s4 = inlined_call_operand.vmem [shape: f32[1,11], index: 4, kind: input, shape index: {}]   ;;  %s342_s5 = inlined_call_operand.hbm [shape: f32[8,11], index: 5, kind: output, shape index: {}]  }
   0x1   :  { %v24_v0 = vld [vmem:[%s338_s1 + $0x10] sm:$0x1]  ;;  %227 = vmatprep.subr.mxu0 %v270_v1  ;;  %v23_v2 = vld [vmem:[%s338_s1 + $0x8] sm:$0xff]  ;;  %236 = vmatprep.subr.mxu1 %v270_v1 }
   0x2   :  { %228 = vmatpush3.msk.msra.mxu0 %vm36_vm0, %v24_v0  ;;  %233 = vmatprep.mubr.msk.f32.mxu0 %vm271_vm1, %v270_v1 }
   0x3   :  { %10 = vsyncpa [#allocation3], 0  ;;  %229 = vmatprep.subr.mxu0 %v270_v1  ;;  %v22_v3 = vld [vmem:[%s338_s1] sm:$0xff]  ;;  %242 = vmatprep.mubr.msk.f32.mxu1 %vm271_vm1, %v270_v1  ;;  %vm32_vm2 = vcmask 138240   ;;  %v113_v5 = vld [vmem:[%s340_s3 + $0x10] sm:$0x1] }
   0x4   :  { %230 = vmatpush3.msra.mxu0 %v23_v2  ;;  %v21_v4 = vld [vmem:[%s337_s0] sm:$0xff]  ;;  %237 = vmatpush3.msk.msra.mxu1 %vm36_vm0, %v113_v5  ;;  %v112_v6 = vld [vmem:[%s340_s3 + $0x8] sm:$0xff]  ;;  %s272_s9 = smov [#allocation2]   ;;  %vm197_vm3 = vcmask 89088  }
   0x5   :  { %231 = vmatprep.subr.mxu0 %v270_v1  ;;  %238 = vmatprep.subr.mxu1 %v270_v1  ;;  %v111_v7 = vld [vmem:[%s340_s3] sm:$0xff]  ;;  %s205_s10 = sshll.u32 %s272_s9, 4  ;;  %s206_s10 = int_to_ptr.vmem [resolvable:$true] %s205_s10 }
   0x6   :  { %232 = vmatpush3.msra.mxu0 %v22_v3  ;;  %239 = vmatpush3.msra.mxu1 %v112_v6  ;;  %v213_v8 = vld [vmem:[%s339_s2] ss:$0 sm:$0xff]  ;;  %s248_s3 = scalar_lea.vmem %s206_s10, 128  ;;  %p253_p1 = scmp.lt.s32.totalorder %s206_s10, %s206_s10 }
   0x7   :  { %234 = vmatmul.mubr.msk.f32.vlgmr.msra.gmra.mxu0 %vm32_vm2, %v21_v4  ;;  %240 = vmatprep.subr.mxu1 %v270_v1  ;;  %v216_v13 = vld [vmem:[%s341_s4] ss:$0 sm:$0xff]  ;;  %p249_p0 = scmp.ne.s32.totalorder %s206_s10, %s248_s3  ;;  %p254_p2 = scmp.lt.s32.totalorder %s248_s3, %s248_s3 }
   0x8   :  { %241 = vmatpush3.msra.mxu1 %v111_v7 }
   0x9   :  { %p255_p3 = por %p254_p2, %p253_p1 }
   0xb   :  { %p256_p4 = pnand %p255_p3, %p249_p0 }
  0xc7   :  { %v106_v9 = vpop.f32.mrf.mxu0 }
  0xc8   :  { %v107_v10 = vadd.f32 %v213_v8, %v106_v9 }
  0xc9   :  { %v235_v11 = vpop.f32.mrf.mxu0 }
  0xca   :  { %v110_v12 = vmax.f32 %v107_v10, 0.0 }
  0xcc   :  { %243 = vmatmul.mubr.msk.f32.vlgmr.msra.gmra.mxu1 %vm32_vm2, %v110_v12 }
 0x18c   :  { %v193_v14 = vpop.f32.mrf.mxu1 }
 0x18d   :  { %v194_v15 = vadd.f32 %v216_v13, %v193_v14 }
 0x18e   :  { %v244_v16 = vpop.f32.mrf.mxu1 }
 0x18f   :  { %198 = vst.msk [vmem:[#allocation2] sm:$0xff] %vm197_vm3, %v194_v15 }
 0x190   :  { %259 = shalt.err (!%p256_p4)
}
 0x191   :  { %208 = dma.vmem_to_hbm [thread:$0]  %s206_s10, 128, %s342_s5, [#allocation3]  }
 0x192   :  { %268 = dma.done.wait [#allocation3], 128  }
 0x193   :  { %269 = vsyncadd [#allocation3], 4294967168 }
 0x194   :  { %212 = vsyncpa [#allocation3], 1 }

</bundles_post_ra>
